<compile_context>
chip_gen: v7x
topology: tpu7x:2x2x1
jax: 0.10.0
libtpu: 0.0.40
codegen_flags: <defaults>
</compile_context>

<pallas_src>
import jax
import jax.numpy as jnp
from jax.experimental import pallas as pl
from jax.experimental.pallas import tpu as pltpu


INPUT_DIM = 2
HIDDEN_DIMS = (64, 32)
OUT_DIM = 1


def _round_up(x, m):
    return ((x + m - 1) // m) * m


def mlp_kernel(x_ref, w1_ref, b1_ref, w2_ref, b2_ref, w3_ref, b3_ref, o_ref):
    # Transposed, lane-dense layout: batch on the lane (last) axis.
    x = x_ref[...]                                        # (INPUT_DIM, bb)

    # Layer 1: Linear(2 -> 64) + ReLU.  K=2 would waste the MXU, so compute it as
    # two VPU broadcast multiply-adds (outer-product style).
    h1 = (w1_ref[:, 0:1] * x[0:1, :]
          + w1_ref[:, 1:2] * x[1:2, :]
          + b1_ref[...])                                  # (64, bb)
    h1 = jnp.maximum(h1, 0.0)
    # nn.Dropout -> identity in eval mode.

    # Layer 2: Linear(64 -> 32) + ReLU (MXU, K=64).
    h2 = jnp.dot(w2_ref[...], h1, preferred_element_type=jnp.float32) + b2_ref[...]
    h2 = jnp.maximum(h2, 0.0)
    # nn.Dropout -> identity in eval mode.

    # Output head: Linear(32 -> 1); result stays lane-dense as (1, bb).
    o = jnp.dot(w3_ref[...], h2, preferred_element_type=jnp.float32) + b3_ref[...]
    o_ref[...] = o.astype(o_ref.dtype)


def mlp_regressor_forward(x, params, *, block_b=2048):
    """Fused MLP forward. x: (B, INPUT_DIM) float32 -> (B,) float32."""
    w1, b1, w2, b2, w3, b3 = params
    B, D = x.shape
    assert D == INPUT_DIM

    # Tile sizing: batch on the lane axis, tiles a multiple of 128 lanes, large by default.
    block_b = max(128, _round_up(block_b, 128))
    bb = min(block_b, _round_up(B, 128))
    Bp = _round_up(B, bb)

    # Layout plumbing in the wrapper: pad batch, put it on the last (lane) axis.
    x_t = jnp.pad(x.astype(jnp.float32), ((0, Bp - B), (0, 0))).T   # (INPUT_DIM, Bp)

    grid = (Bp // bb,)

    flops = 2 * Bp * (INPUT_DIM * HIDDEN_DIMS[0]
                      + HIDDEN_DIMS[0] * HIDDEN_DIMS[1]
                      + HIDDEN_DIMS[1] * OUT_DIM)
    param_bytes = sum(int(p.size) * p.dtype.itemsize for p in params)
    bytes_accessed = Bp * (INPUT_DIM + OUT_DIM) * 4 + param_bytes

    out = pl.pallas_call(
        mlp_kernel,
        out_shape=jax.ShapeDtypeStruct((OUT_DIM, Bp), jnp.float32),
        grid_spec=pltpu.PrefetchScalarGridSpec(
            num_scalar_prefetch=0,
            grid=grid,
            in_specs=[
                # x tiled over batch (lane axis); small weights/biases VMEM-resident.
                pl.BlockSpec((INPUT_DIM, bb), lambda i: (0, i)),
                pl.BlockSpec(w1.shape, lambda i: (0, 0)),
                pl.BlockSpec(b1.shape, lambda i: (0, 0)),
                pl.BlockSpec(w2.shape, lambda i: (0, 0)),
                pl.BlockSpec(b2.shape, lambda i: (0, 0)),
                pl.BlockSpec(w3.shape, lambda i: (0, 0)),
                pl.BlockSpec(b3.shape, lambda i: (0, 0)),
            ],
            out_specs=pl.BlockSpec((OUT_DIM, bb), lambda i: (0, i)),
        ),
        compiler_params=pltpu.CompilerParams(
            dimension_semantics=("parallel",)),
        cost_estimate=pl.CostEstimate(
            flops=flops, transcendentals=0, bytes_accessed=bytes_accessed),
    )(x_t, w1, b1, w2, b2, w3, b3)

    # matches torch: self.model(x).squeeze(-1)
    return out[0, :B]


def init_params(key):
    """Deterministic parameter init (PyTorch (out, in) weight layout; (out, 1) biases)."""
    k1, k2, k3, k4, k5, k6 = jax.random.split(key, 6)
    d0, d1, d2, d3 = (INPUT_DIM,) + HIDDEN_DIMS + (OUT_DIM,)
    w1 = jax.random.normal(k1, (d1, d0), jnp.float32) * 0.1
    b1 = jax.random.normal(k2, (d1, 1), jnp.float32) * 0.1
    w2 = jax.random.normal(k3, (d2, d1), jnp.float32) * 0.1
    b2 = jax.random.normal(k4, (d2, 1), jnp.float32) * 0.1
    w3 = jax.random.normal(k5, (d3, d2), jnp.float32) * 0.1
    b3 = jax.random.normal(k6, (d3, 1), jnp.float32) * 0.1
    return (w1, b1, w2, b2, w3, b3)


def mlp_reference(x, params):
    w1, b1, w2, b2, w3, b3 = params
    h1 = jnp.maximum(x @ w1.T + b1[:, 0], 0.0)
    h2 = jnp.maximum(h1 @ w2.T + b2[:, 0], 0.0)
    return (h2 @ w3.T + b3[:, 0])[:, 0]


if __name__ == "__main__":
    key = jax.random.PRNGKey(0)
    kx, kp = jax.random.split(key)

    B = 300  # small batch; non-multiple-of-128 exercises the padding path
    x = jax.random.normal(kx, (B, INPUT_DIM), jnp.float32)
    params = init_params(kp)

    y_ref = mlp_reference(x, params)

    # Default (large) tile: single grid step at this small B.
    y = jax.block_until_ready(mlp_regressor_forward(x, params))
    assert y.shape == (B,)
    assert jnp.allclose(y, y_ref, atol=1e-5, rtol=1e-5), (y, y_ref)

    # Small tile: multi-step parallel grid (tiling / megacore-sharding path).
    y2 = jax.block_until_ready(mlp_regressor_forward(x, params, block_b=128))
    assert jnp.allclose(y2, y_ref, atol=1e-5, rtol=1e-5), (y2, y_ref)

    print("KERNEL_OK")
</pallas_src>

<mosaic_0001>
module attributes {stable_mosaic.version = 11 : i64} {
  func.func @mlp_kernel(%arg0: i32, %arg1: memref<2x384xf32, #tpu.memory_space<vmem>>, %arg2: memref<64x2xf32, #tpu.memory_space<vmem>>, %arg3: memref<64x1xf32, #tpu.memory_space<vmem>>, %arg4: memref<32x64xf32, #tpu.memory_space<vmem>>, %arg5: memref<32x1xf32, #tpu.memory_space<vmem>>, %arg6: memref<1x32xf32, #tpu.memory_space<vmem>>, %arg7: memref<1x1xf32, #tpu.memory_space<vmem>>, %arg8: memref<1x384xf32, #tpu.memory_space<vmem>>) attributes {dimension_semantics = [#tpu.dimension_semantics<parallel>], iteration_bounds = array<i64: 1>, scalar_prefetch = 0 : i64, scratch_operands = 0 : i64, tpu.core_type = #tpu.core_type<tc>, window_params = [{transform_indices = @transform_0, window_bounds = array<i64: 2, 384>}, {pipeline_mode = #tpu.pipeline_mode<synchronous>, transform_indices = @transform_1, window_bounds = array<i64: 64, 2>}, {pipeline_mode = #tpu.pipeline_mode<synchronous>, transform_indices = @transform_2, window_bounds = array<i64: 64, 1>}, {pipeline_mode = #tpu.pipeline_mode<synchronous>, transform_indices = @transform_3, window_bounds = array<i64: 32, 64>}, {pipeline_mode = #tpu.pipeline_mode<synchronous>, transform_indices = @transform_4, window_bounds = array<i64: 32, 1>}, {pipeline_mode = #tpu.pipeline_mode<synchronous>, transform_indices = @transform_5, window_bounds = array<i64: 1, 32>}, {pipeline_mode = #tpu.pipeline_mode<synchronous>, transform_indices = @transform_6, window_bounds = array<i64: 1, 1>}, {transform_indices = @transform_7, window_bounds = array<i64: 1, 384>}]} {
    %c0 = arith.constant 0 : index
    %c0_0 = arith.constant 0 : index
    %0 = vector.load %arg1[%c0, %c0_0] : memref<2x384xf32, #tpu.memory_space<vmem>>, vector<2x384xf32>
    %c0_1 = arith.constant 0 : index
    %c0_2 = arith.constant 0 : index
    %1 = vector.load %arg2[%c0_1, %c0_2] : memref<64x2xf32, #tpu.memory_space<vmem>>, vector<64x1xf32>
    %2 = vector.extract_strided_slice %0 {offsets = [0, 0], sizes = [1, 384], strides = [1, 1]} : vector<2x384xf32> to vector<1x384xf32>
    %3 = vector.broadcast %1 : vector<64x1xf32> to vector<64x384xf32>
    %4 = vector.broadcast %2 : vector<1x384xf32> to vector<64x384xf32>
    %5 = arith.mulf %3, %4 : vector<64x384xf32>
    %c0_3 = arith.constant 0 : index
    %c1 = arith.constant 1 : index
    %6 = vector.load %arg2[%c0_3, %c1] : memref<64x2xf32, #tpu.memory_space<vmem>>, vector<64x1xf32>
    %7 = vector.extract_strided_slice %0 {offsets = [1, 0], sizes = [1, 384], strides = [1, 1]} : vector<2x384xf32> to vector<1x384xf32>
    %8 = vector.broadcast %6 : vector<64x1xf32> to vector<64x384xf32>
    %9 = vector.broadcast %7 : vector<1x384xf32> to vector<64x384xf32>
    %10 = arith.mulf %8, %9 : vector<64x384xf32>
    %11 = arith.addf %5, %10 : vector<64x384xf32>
    %c0_4 = arith.constant 0 : index
    %c0_5 = arith.constant 0 : index
    %12 = vector.load %arg3[%c0_4, %c0_5] : memref<64x1xf32, #tpu.memory_space<vmem>>, vector<64x1xf32>
    %13 = vector.broadcast %12 : vector<64x1xf32> to vector<64x384xf32>
    %14 = arith.addf %11, %13 : vector<64x384xf32>
    %cst = arith.constant 0.000000e+00 : f32
    %15 = vector.broadcast %cst : f32 to vector<64x384xf32>
    %16 = arith.maximumf %14, %15 : vector<64x384xf32>
    %c0_6 = arith.constant 0 : index
    %c0_7 = arith.constant 0 : index
    %17 = vector.load %arg4[%c0_6, %c0_7] : memref<32x64xf32, #tpu.memory_space<vmem>>, vector<32x64xf32>
    %cst_8 = arith.constant dense<0.000000e+00> : vector<32x384xf32>
    %18 = tpu.matmul %17, %16, %cst_8 {dimension_numbers = #tpu.dot_dimension_numbers<[1], [0], [0], [1], [0, 0, 1, 1], [], []>} : vector<32x64xf32>, vector<64x384xf32>, vector<32x384xf32> -> vector<32x384xf32>
    %c0_9 = arith.constant 0 : index
    %c0_10 = arith.constant 0 : index
    %19 = vector.load %arg5[%c0_9, %c0_10] : memref<32x1xf32, #tpu.memory_space<vmem>>, vector<32x1xf32>
    %20 = vector.broadcast %19 : vector<32x1xf32> to vector<32x384xf32>
    %21 = arith.addf %18, %20 : vector<32x384xf32>
    %cst_11 = arith.constant 0.000000e+00 : f32
    %22 = vector.broadcast %cst_11 : f32 to vector<32x384xf32>
    %23 = arith.maximumf %21, %22 : vector<32x384xf32>
    %c0_12 = arith.constant 0 : index
    %c0_13 = arith.constant 0 : index
    %24 = vector.load %arg6[%c0_12, %c0_13] : memref<1x32xf32, #tpu.memory_space<vmem>>, vector<1x32xf32>
    %cst_14 = arith.constant dense<0.000000e+00> : vector<1x384xf32>
    %25 = tpu.matmul %24, %23, %cst_14 {dimension_numbers = #tpu.dot_dimension_numbers<[1], [0], [0], [1], [0, 0, 1, 1], [], []>} : vector<1x32xf32>, vector<32x384xf32>, vector<1x384xf32> -> vector<1x384xf32>
    %c0_15 = arith.constant 0 : index
    %c0_16 = arith.constant 0 : index
    %26 = vector.load %arg7[%c0_15, %c0_16] : memref<1x1xf32, #tpu.memory_space<vmem>>, vector<1x1xf32>
    %27 = vector.broadcast %26 : vector<1x1xf32> to vector<1x384xf32>
    %28 = arith.addf %25, %27 : vector<1x384xf32>
    %c0_17 = arith.constant 0 : index
    %c0_18 = arith.constant 0 : index
    %29 = vector.load %arg8[%c0_17, %c0_18] : memref<1x384xf32, #tpu.memory_space<vmem>>, vector<1x384xf32>
    tpu.vector_store %arg8[%c0_17, %c0_18], %28 {strides = array<i32>} : memref<1x384xf32, #tpu.memory_space<vmem>>, vector<1x384xf32>,
    return
  }
  func.func @transform_0(%arg0: i32) -> (i32, i32) {
    %c0_i32 = arith.constant 0 : i32
    %c0_i32_0 = arith.constant 0 : i32
    return %c0_i32, %arg0 : i32, i32
  }
  func.func @transform_1(%arg0: i32) -> (i32, i32) {
    %c0_i32 = arith.constant 0 : i32
    %c0_i32_0 = arith.constant 0 : i32
    %c0_i32_1 = arith.constant 0 : i32
    return %c0_i32, %c0_i32_0 : i32, i32
  }
  func.func @transform_2(%arg0: i32) -> (i32, i32) {
    %c0_i32 = arith.constant 0 : i32
    %c0_i32_0 = arith.constant 0 : i32
    %c0_i32_1 = arith.constant 0 : i32
    return %c0_i32, %c0_i32_0 : i32, i32
  }
  func.func @transform_3(%arg0: i32) -> (i32, i32) {
    %c0_i32 = arith.constant 0 : i32
    %c0_i32_0 = arith.constant 0 : i32
    %c0_i32_1 = arith.constant 0 : i32
    return %c0_i32, %c0_i32_0 : i32, i32
  }
  func.func @transform_4(%arg0: i32) -> (i32, i32) {
    %c0_i32 = arith.constant 0 : i32
    %c0_i32_0 = arith.constant 0 : i32
    %c0_i32_1 = arith.constant 0 : i32
    return %c0_i32, %c0_i32_0 : i32, i32
  }
  func.func @transform_5(%arg0: i32) -> (i32, i32) {
    %c0_i32 = arith.constant 0 : i32
    %c0_i32_0 = arith.constant 0 : i32
    %c0_i32_1 = arith.constant 0 : i32
    return %c0_i32, %c0_i32_0 : i32, i32
  }
  func.func @transform_6(%arg0: i32) -> (i32, i32) {
    %c0_i32 = arith.constant 0 : i32
    %c0_i32_0 = arith.constant 0 : i32
    %c0_i32_1 = arith.constant 0 : i32
    return %c0_i32, %c0_i32_0 : i32, i32
  }
  func.func @transform_7(%arg0: i32) -> (i32, i32) {
    %c0_i32 = arith.constant 0 : i32
    %c0_i32_0 = arith.constant 0 : i32
    return %c0_i32, %arg0 : i32, i32
  }
}

</mosaic_0001>

<bundles_post_ra>
// kernel: tpu_custom_call.1
= control target key start
LH: loop header
LB: loop body
LE: loop exit
PB: predicated region body
PF: predicated region fallthrough
CT: control target
= control target key end

     0   :  { %s1175_s0 = inlined_call_operand.vmem [shape: f32[2,384], index: 0, kind: input, shape index: {}]   ;;  %s1176_s1 = inlined_call_operand.vmem [shape: f32[64,2], index: 1, kind: input, shape index: {}]   ;;  %s1177_s2 = inlined_call_operand.vmem [shape: f32[64,1], index: 2, kind: input, shape index: {}]   ;;  %s1178_s3 = inlined_call_operand.vmem [shape: f32[32,64], index: 3, kind: input, shape index: {}]   ;;  %s1179_s4 = inlined_call_operand.vmem [shape: f32[32,1], index: 4, kind: input, shape index: {}]   ;;  %s1180_s5 = inlined_call_operand.vmem [shape: f32[1,32], index: 5, kind: input, shape index: {}]   ;;  %s1181_s6 = inlined_call_operand.<no memory space> [shape: f32[1,1], index: 6, kind: input, shape index: {}]   ;;  %s1182_s7 = inlined_call_operand.hbm [shape: f32[1,384], index: 7, kind: output, shape index: {}]  }
   0x1   :  { %v12_v0 = vstv %s1181_s6 }
   0x2   :  { %13 = vst [vmem:[#allocation2] sm:$0x1] %v12_v0 }
   0x3   :  { %v32_v1 = vld [vmem:[%s1176_s1 + $0x10] sm:$0xff]  ;;  %v30_v2 = vld [vmem:[%s1176_s1] sm:$0xff]  ;;  %v909_v3 = vmov 1   ;;  %v31_v5 = vld [vmem:[%s1176_s1 + $0x8] sm:$0xff] }
   0x4   :  { %877 = vset.pattern.permute.xlu0 %v909_v3  ;;  %875 = vset.pattern.permute.xlu1 %v909_v3  ;;  %v34_v4 = vld [vmem:[%s1176_s1 + $0x20] sm:$0xff]  ;;  %v36_v6 = vld [vmem:[%s1176_s1 + $0x30] sm:$0xff] }
   0x5   :  { %139 = vperm.xlu0 %877, %v32_v1   ;;  %131 = vperm.xlu1 %875, %v30_v2  }
   0x9   :  { %147 = vperm.xlu0 %877, %v34_v4   ;;  %135 = vperm.xlu1 %875, %v31_v5  }
   0xa   :  { %14 = vsyncpa [#allocation4], 0  ;;  %v33_v7 = vld [vmem:[%s1176_s1 + $0x18] sm:$0xff]  ;;  %v910_v8 = vmov 0   ;;  %v237_v9 = vld [vmem:[%s1177_s2] sm:$0xff]  ;;  %vm361_vm0 = vcmask 523264   ;;  %v79_v26 = vlaneseq }
   0xb   :  { %v238_v10 = vld [vmem:[%s1177_s2 + $0x8] sm:$0xff]  ;;  %v240_v12 = vld [vmem:[%s1177_s2 + $0x18] sm:$0xff]  ;;  %v337_v14 = vld [vmem:[%s1179_s4] sm:$0xff]  ;;  %v911_v25 = vmov 0.0   ;;  %vm913_vm1 = vmmov 0   ;;  %vm571_vm2 = vcmask 261120  }
   0xc   :  { %v35_v11 = vld [vmem:[%s1176_s1 + $0x28] sm:$0xff]  ;;  %v239_v15 = vld [vmem:[%s1177_s2 + $0x10] sm:$0xff]  ;;  %v561_v17 = vld [vmem:[#allocation2] sm:$0x1]  ;;  %438 = vmatprep.mubr.f32.mxu0 %v911_v25  ;;  %v1030_v29 = vshrl.u32 %v79_v26, 7  ;;  %vm745_vm3 = vcmp.lt.s32.totalorder %v79_v26, 384 }
   0xd   :  { %155 = vperm.xlu0 %877, %v36_v6   ;;  %876 = vset.pattern.permute.xlu1 %v910_v8  ;;  %v242_v13 = vld [vmem:[%s1177_s2 + $0x28] sm:$0xff]  ;;  %v339_v16 = vld [vmem:[%s1179_s4 + $0x10] sm:$0xff]  ;;  %v37_v18 = vld [vmem:[%s1176_s1 + $0x38] sm:$0xff] }
   0xe   :  { %55 = vperm.xlu1 %876, %v33_v7   ;;  %v241_v19 = vld [vmem:[%s1177_s2 + $0x20] sm:$0xff]  ;;  %v243_v20 = vld [vmem:[%s1177_s2 + $0x30] sm:$0xff]  ;;  %v244_v21 = vld [vmem:[%s1177_s2 + $0x38] sm:$0xff]  ;;  %v168_v32 = vsub.s32 3, %v1030_v29  ;;  %v85_v34 = vsub.s32 2, %v1030_v29  ;;  %v164_v35 = vsub.s32 1, %v1030_v29 }
   0xf   :  { %v338_v22 = vld [vmem:[%s1179_s4 + $0x8] sm:$0xff]  ;;  %v340_v23 = vld [vmem:[%s1179_s4 + $0x18] sm:$0xff]  ;;  %v1022_v24 = vld [vmem:[%s1178_s3] sm:$0xff]  ;;  %v172_v36 = vsub.s32 5, %v1030_v29  ;;  %v1044_v38 = vsub.s32 0, %v1030_v29  ;;  %v89_v39 = vsub.s32 4, %v1030_v29 }
  0x10   :  { %805 = vmatprep.mubr.msk.f32.mxu1 %vm361_vm0, %v1022_v24  ;;  %v29_v37 = vld [vmem:[%s1175_s0] sm:$0x3f] }
  0x11   :  { %882 = vset.pattern.permute.xlu0 %v910_v8  ;;  %v169_v41 = vrot.slane %v29_v37, %v168_v32  ;;  %v86_v42 = vrot.slane %v29_v37, %v85_v34  ;;  %v165_v43 = vrot.slane %v29_v37, %v164_v35  ;;  %v173_v44 = vrot.slane %v29_v37, %v172_v36 }
  0x12   :  { %40 = vperm.xlu0 %882, %v30_v2   ;;  %878 = vset.pattern.permute.xlu1 %v909_v3  ;;  %v82_v45 = vrot.slane %v29_v37, %v1044_v38  ;;  %v90_v46 = vrot.slane %v29_v37, %v89_v39 }
  0x13   :  { %143 = vperm.xlu1 %878, %v33_v7   ;;  %v1050_v49 = vrot.slane %v169_v41, %v164_v35  ;;  %v1053_v50 = vrot.slane %v86_v42, %v1044_v38  ;;  %v1055_v51 = vrot.slane %v165_v43, %v164_v35  ;;  %v1057_v52 = vrot.slane %v173_v44, %v164_v35 }
  0x14   :  { %v1060_v53 = vrot.slane %v82_v45, %v1044_v38  ;;  %v1063_v54 = vrot.slane %v90_v46, %v1044_v38 }
  0x16   :  { %45 = vperm.xlu0 %882, %v31_v5  }
  0x17   :  { %879 = vset.pattern.permute.xlu1 %v910_v8 }
  0x18   :  { %247 = vperm.xlu1 %879, %v237_v9  }
  0x1a   :  { %50 = vperm.xlu0 %882, %v32_v1  }
  0x1c   :  { %60 = vperm.xlu1 %879, %v34_v4  }
  0x1e   :  { %252 = vperm.xlu0 %882, %v238_v10  }
  0x20   :  { %65 = vperm.xlu1 %879, %v35_v11  }
  0x22   :  { %262 = vperm.xlu0 %882, %v240_v12  }
  0x24   :  { %880 = vset.pattern.permute.xlu1 %v909_v3 }
  0x25   :  { %151 = vperm.xlu1 %880, %v35_v11  }
  0x26   :  { %272 = vperm.xlu0 %882, %v242_v13  }
  0x29   :  { %881 = vset.pattern.permute.xlu1 %v910_v8 }
  0x2a   :  { %343 = vperm.xlu0 %882, %v337_v14   ;;  %257 = vperm.xlu1 %881, %v239_v15  }
  0x2e   :  { %353 = vperm.xlu0 %882, %v339_v16   ;;  %70 = vperm.xlu1 %881, %v36_v6  }
  0x32   :  { %564 = vperm.xlu0 %882, %v561_v17   ;;  %75 = vperm.xlu1 %881, %v37_v18  }
  0x36   :  { %883 = vset.pattern.permute.xlu1 %v909_v3 }
  0x37   :  { %159 = vperm.xlu1 %883, %v37_v18  }
  0x3b   :  { %884 = vset.pattern.permute.xlu1 %v910_v8 }
  0x3c   :  { %267 = vperm.xlu1 %884, %v241_v19  }
  0x40   :  { %277 = vperm.xlu1 %884, %v243_v20  }
  0x44   :  { %282 = vperm.xlu1 %884, %v244_v21  }
  0x48   :  { %348 = vperm.xlu1 %884, %v338_v22  }
  0x4c   :  { %358 = vperm.xlu1 %884, %v340_v23  }
  0x84   :  { %v132_v27 = vpop.permute.xlu1 %131  ;;  %v1027_v28 = vpop.permute.xlu0 %139 }
  0x85   :  { %v190_v60 = vmul.f32 %v1050_v49, %v132_v27  ;;  %v189_v0 = vmul.f32 %v1055_v51, %v132_v27  ;;  %v191_v1 = vmul.f32 %v1057_v52, %v132_v27  ;;  %v195_v21 = vmul.f32 %v1055_v51, %v1027_v28 }
  0x86   :  { %v196_v35 = vmul.f32 %v1050_v49, %v1027_v28  ;;  %v197_v36 = vmul.f32 %v1057_v52, %v1027_v28 }
  0x88   :  { %v136_v30 = vpop.permute.xlu1 %135  ;;  %v1032_v31 = vpop.permute.xlu0 %147 }
  0x89   :  { %v192_v3 = vmul.f32 %v1055_v51, %v136_v30  ;;  %v193_v4 = vmul.f32 %v1050_v49, %v136_v30  ;;  %v194_v5 = vmul.f32 %v1057_v52, %v136_v30 }
  0x8c   :  { %v1035_v33 = vpop.permute.xlu0 %155 }
  0x8d   :  { %v1047_v40 = vpop.permute.xlu1 %55 }
  0x8e   :  { %v116_v45 = vmul.f32 %v1053_v50, %v1047_v40  ;;  %v115_v28 = vmul.f32 %v1060_v53, %v1047_v40 }
  0x91   :  { %v41_v47 = vpop.permute.xlu0 %40 }
  0x92   :  { %v144_v48 = vpop.permute.xlu1 %143  ;;  %v107_v56 = vmul.f32 %v1053_v50, %v41_v47  ;;  %v106_v57 = vmul.f32 %v1060_v53, %v41_v47  ;;  %v108_v58 = vmul.f32 %v1063_v54, %v41_v47 }
  0x93   :  { %v199_v37 = vmul.f32 %v1050_v49, %v144_v48  ;;  %v198_v41 = vmul.f32 %v1055_v51, %v144_v48  ;;  %v200_v42 = vmul.f32 %v1057_v52, %v144_v48 }
  0x94   :  { %v214_v6 = vadd.f32 %v190_v60, %v107_v56  ;;  %v213_v7 = vadd.f32 %v189_v0, %v106_v57  ;;  %v215_v8 = vadd.f32 %v191_v1, %v108_v58  ;;  %v117_v57 = vmul.f32 %v1063_v54, %v1047_v40 }
  0x95   :  { %v46_v55 = vpop.permute.xlu0 %45  ;;  %v223_v58 = vadd.f32 %v199_v37, %v116_v45 }
  0x96   :  { %v109_v61 = vmul.f32 %v1060_v53, %v46_v55  ;;  %v110_v62 = vmul.f32 %v1053_v50, %v46_v55  ;;  %v111_v63 = vmul.f32 %v1063_v54, %v46_v55  ;;  %v224_v60 = vadd.f32 %v200_v42, %v117_v57 }
  0x97   :  { %v248_v59 = vpop.permute.xlu1 %247 }
  0x98   :  { %v216_v10 = vadd.f32 %v192_v3, %v109_v61  ;;  %v218_v11 = vadd.f32 %v194_v5, %v111_v63  ;;  %v217_v12 = vadd.f32 %v193_v4, %v110_v62  ;;  %v286_v13 = vadd.f32 %v248_v59, %v214_v6 }
  0x99   :  { %v51_v2 = vpop.permute.xlu0 %50  ;;  %v285_v14 = vadd.f32 %v248_v59, %v213_v7  ;;  %v287_v15 = vadd.f32 %v248_v59, %v215_v8  ;;  %v222_v59 = vadd.f32 %v198_v41, %v115_v28 }
  0x9a   :  { %v310_v22 = vmax.f32 %v286_v13, 0.0  ;;  %v112_v46 = vmul.f32 %v1060_v53, %v51_v2  ;;  %v113_v47 = vmul.f32 %v1053_v50, %v51_v2  ;;  %v114_v55 = vmul.f32 %v1063_v54, %v51_v2 }
  0x9b   :  { %v1077_v9 = vpop.permute.xlu1 %60  ;;  %v311_v27 = vmax.f32 %v287_v15, 0.0  ;;  %v309_v32 = vmax.f32 %v285_v14, 0.0 }
  0x9c   :  { %v219_v62 = vadd.f32 %v195_v21, %v112_v46  ;;  %v220_v63 = vadd.f32 %v196_v35, %v113_v47  ;;  %v221_v0 = vadd.f32 %v197_v36, %v114_v55  ;;  %v203_v36 = vmul.f32 %v1057_v52, %v1032_v31 }
  0x9d   :  { %v253_v16 = vpop.permute.xlu0 %252  ;;  %v118_v37 = vmul.f32 %v1060_v53, %v1077_v9  ;;  %v120_v41 = vmul.f32 %v1063_v54, %v1077_v9 }
  0x9e   :  { %v288_v17 = vadd.f32 %v253_v16, %v216_v10  ;;  %v290_v18 = vadd.f32 %v253_v16, %v218_v11  ;;  %v289_v19 = vadd.f32 %v253_v16, %v217_v12 }
  0x9f   :  { %v1079_v20 = vpop.permute.xlu1 %65 }
  0xa0   :  { %v313_v23 = vmax.f32 %v289_v19, 0.0  ;;  %v314_v30 = vmax.f32 %v290_v18, 0.0  ;;  %v312_v34 = vmax.f32 %v288_v17, 0.0  ;;  %v121_v21 = vmul.f32 %v1060_v53, %v1079_v20 }
  0xa1   :  { %v263_v48 = vpop.permute.xlu0 %262 }
  0xa2   :  { %v822_v39 = vpack.c.bf16 %v313_v23, %v310_v22  ;;  %v838_v43 = vpack.c.bf16 %v314_v30, %v311_v27  ;;  %v824_v44 = vpack.c.bf16 %v312_v34, %v309_v32  ;;  %v295_v61 = vadd.f32 %v263_v48, %v223_v58 }
  0xa3   :  { %v294_v1 = vadd.f32 %v263_v48, %v222_v59  ;;  %v296_v2 = vadd.f32 %v263_v48, %v224_v60  ;;  %v122_v22 = vmul.f32 %v1053_v50, %v1079_v20  ;;  %v201_v27 = vmul.f32 %v1055_v51, %v1032_v31 }
  0xa4   :  { %v152_v56 = vpop.permute.xlu1 %151  ;;  %823 = vmatprep.subr.bf16.mxu0 %v822_v39  ;;  %839 = vmatprep.subr.bf16.mxu1 %v838_v43  ;;  %v319_v7 = vmax.f32 %v295_v61, 0.0  ;;  %v202_v30 = vmul.f32 %v1050_v49, %v1032_v31  ;;  %v123_v32 = vmul.f32 %v1063_v54, %v1079_v20  ;;  %v119_v39 = vmul.f32 %v1053_v50, %v1077_v9 }
  0xa5   :  { %825 = vmatpush1.bf16.msra.mxu0 %v824_v44  ;;  %841 = vmatpush3.bf16.msra.mxu1 %v838_v43  ;;  %v318_v11 = vmax.f32 %v294_v1, 0.0  ;;  %v320_v12 = vmax.f32 %v296_v2, 0.0  ;;  %v204_v17 = vmul.f32 %v1055_v51, %v152_v56  ;;  %v205_v18 = vmul.f32 %v1050_v49, %v152_v56  ;;  %v273_v44 = vpop.permute.xlu0 %272 }
  0xa6   :  { %v206_v23 = vmul.f32 %v1057_v52, %v152_v56  ;;  %v207_v20 = vmul.f32 %v1055_v51, %v1035_v33  ;;  %v208_v31 = vmul.f32 %v1050_v49, %v1035_v33  ;;  %v225_v47 = vadd.f32 %v201_v27, %v118_v37 }
  0xa7   :  { %v228_v34 = vadd.f32 %v204_v17, %v121_v21  ;;  %v229_v35 = vadd.f32 %v205_v18, %v122_v22  ;;  %v226_v55 = vadd.f32 %v202_v30, %v119_v39  ;;  %v227_v56 = vadd.f32 %v203_v36, %v120_v41  ;;  %v334_v39 = vld [vmem:[%s1178_s3 + $0x8] sm:$0xff]  ;;  %v335_v41 = vld [vmem:[%s1178_s3 + $0x10] sm:$0xff] }
  0xa8   :  { %v230_v43 = vadd.f32 %v206_v23, %v123_v32  ;;  %v209_v59 = vmul.f32 %v1057_v52, %v1035_v33 }
  0xa9   :  { %v258_v3 = vpop.permute.xlu1 %257  ;;  %v300_v45 = vadd.f32 %v273_v44, %v228_v34  ;;  %v301_v46 = vadd.f32 %v273_v44, %v229_v35 }
  0xaa   :  { %v291_v4 = vadd.f32 %v258_v3, %v219_v62  ;;  %v292_v5 = vadd.f32 %v258_v3, %v220_v63  ;;  %v293_v6 = vadd.f32 %v258_v3, %v221_v0  ;;  %v302_v28 = vadd.f32 %v273_v44, %v230_v43  ;;  %v344_v43 = vpop.permute.xlu0 %343 }
  0xab   :  { %v324_v63 = vmax.f32 %v300_v45, 0.0  ;;  %v325_v0 = vmax.f32 %v301_v46, 0.0 }
  0xac   :  { %v315_v8 = vmax.f32 %v291_v4, 0.0  ;;  %v316_v40 = vmax.f32 %v292_v5, 0.0  ;;  %v317_v10 = vmax.f32 %v293_v6, 0.0 }
  0xad   :  { %v71_v13 = vpop.permute.xlu1 %70 }
  0xae   :  { %v826_v14 = vpack.c.bf16 %v319_v7, %v316_v40  ;;  %v842_v15 = vpack.c.bf16 %v320_v12, %v317_v10  ;;  %v828_v16 = vpack.c.bf16 %v318_v11, %v315_v8  ;;  %v124_v57 = vmul.f32 %v1060_v53, %v71_v13 }
  0xaf   :  { %v125_v48 = vmul.f32 %v1053_v50, %v71_v13  ;;  %v126_v9 = vmul.f32 %v1063_v54, %v71_v13  ;;  %v326_v7 = vmax.f32 %v302_v28, 0.0 }
  0xb0   :  { %827 = vmatprep.subr.bf16.mxu0 %v826_v14  ;;  %843 = vmatprep.subr.bf16.mxu1 %v842_v15  ;;  %v231_v40 = vadd.f32 %v207_v20, %v124_v57 }
  0xb1   :  { %v76_v19 = vpop.permute.xlu1 %75  ;;  %829 = vmatpush1.bf16.msra.mxu0 %v828_v16  ;;  %845 = vmatpush3.bf16.msra.mxu1 %v842_v15  ;;  %v232_v10 = vadd.f32 %v208_v31, %v125_v48  ;;  %v233_v11 = vadd.f32 %v209_v59, %v126_v9 }
  0xb2   :  { %v127_v33 = vmul.f32 %v1060_v53, %v76_v19  ;;  %v128_v12 = vmul.f32 %v1053_v50, %v76_v19  ;;  %v129_v13 = vmul.f32 %v1063_v54, %v76_v19 }
  0xb6   :  { %v160_v42 = vpop.permute.xlu1 %159 }
  0xb7   :  { %v210_v1 = vmul.f32 %v1055_v51, %v160_v42  ;;  %v211_v2 = vmul.f32 %v1050_v49, %v160_v42  ;;  %v212_v3 = vmul.f32 %v1057_v52, %v160_v42  ;;  %v336_v42 = vld [vmem:[%s1178_s3 + $0x18] sm:$0xff] }
  0xb9   :  { %v234_v17 = vadd.f32 %v210_v1, %v127_v33  ;;  %v235_v18 = vadd.f32 %v211_v2, %v128_v12  ;;  %v236_v21 = vadd.f32 %v212_v3, %v129_v13 }
  0xbb   :  { %v268_v58 = vpop.permute.xlu1 %267 }
  0xbc   :  { %v297_v60 = vadd.f32 %v268_v58, %v225_v47  ;;  %v298_v61 = vadd.f32 %v268_v58, %v226_v55  ;;  %v299_v62 = vadd.f32 %v268_v58, %v227_v56  ;;  %v354_v56 = vpop.permute.xlu0 %353 }
  0xbe   :  { %v321_v4 = vmax.f32 %v297_v60, 0.0  ;;  %v322_v5 = vmax.f32 %v298_v61, 0.0  ;;  %v323_v6 = vmax.f32 %v299_v62, 0.0 }
  0xbf   :  { %v278_v8 = vpop.permute.xlu1 %277 }
  0xc0   :  { %v830_v14 = vpack.c.bf16 %v325_v0, %v322_v5  ;;  %v303_v51 = vadd.f32 %v278_v8, %v231_v40  ;;  %v304_v15 = vadd.f32 %v278_v8, %v232_v10  ;;  %v846_v49 = vpack.c.bf16 %v326_v7, %v323_v6 }
  0xc1   :  { %v832_v16 = vpack.c.bf16 %v324_v63, %v321_v4  ;;  %v305_v52 = vadd.f32 %v278_v8, %v233_v11 }
  0xc2   :  { %831 = vmatprep.subr.bf16.mxu0 %v830_v14  ;;  %847 = vmatprep.subr.bf16.mxu1 %v846_v49  ;;  %v327_v50 = vmax.f32 %v303_v51, 0.0  ;;  %v328_v30 = vmax.f32 %v304_v15, 0.0  ;;  %v560_v15 = vld [vmem:[%s1180_s5] sm:$0x1]  ;;  %s915_s5 = smov [#allocation3]  }
  0xc3   :  { %v283_v22 = vpop.permute.xlu1 %282  ;;  %833 = vmatpush1.bf16.msra.mxu0 %v832_v16  ;;  %849 = vmatpush3.bf16.msra.mxu1 %v846_v49  ;;  %v329_v54 = vmax.f32 %v305_v52, 0.0  ;;  %s754_s25 = sshll.u32 %s915_s5, 4  ;;  %s755_s25 = int_to_ptr.vmem [resolvable:$true] %s754_s25 }
  0xc4   :  { %v306_v23 = vadd.f32 %v283_v22, %v234_v17  ;;  %v307_v27 = vadd.f32 %v283_v22, %v235_v18  ;;  %v308_v53 = vadd.f32 %v283_v22, %v236_v21  ;;  %s885_s26 = scalar_lea.vmem %s755_s25, 48  ;;  %s889_s27 = scalar_lea.vmem %s755_s25, 64 }
  0xc5   :  { %p886_p0 = scmp.ne.s32.totalorder %s755_s25, %s885_s26  ;;  %p890_p1 = scmp.lt.s32.totalorder %s755_s25, %s755_s25 }
  0xc6   :  { %v330_v19 = vmax.f32 %v306_v23, 0.0  ;;  %v331_v32 = vmax.f32 %v307_v27, 0.0  ;;  %v332_v34 = vmax.f32 %v308_v53, 0.0  ;;  %p891_p2 = scmp.lt.s32.totalorder %s889_s27, %s885_s26 }
  0xc7   :  { %v349_v44 = vpop.permute.xlu1 %348 }
  0xc8   :  { %v834_v35 = vpack.c.bf16 %v331_v32, %v328_v30  ;;  %v850_v36 = vpack.c.bf16 %v332_v34, %v329_v54  ;;  %v836_v37 = vpack.c.bf16 %v330_v19, %v327_v50  ;;  %v914_v30 = vmov 1966171168   ;;  %v565_v19 = vpop.permute.xlu0 %564  ;;  %p892_p3 = por %p891_p2, %p890_p1 }
  0xc9   :  { %v721_v54 = vunpack.c.l.s4 %v914_v30  ;;  %v570_v34 = vrot.slane %v565_v19, %v1044_v38 }
  0xca   :  { %835 = vmatprep.subr.bf16.mxu0 %v834_v35  ;;  %851 = vmatprep.subr.bf16.mxu1 %v850_v36  ;;  %p893_p4 = pnand %p892_p3, %p886_p0 }
  0xcb   :  { %837 = vmatpush1.bf16.msra.mxu0 %v836_v37  ;;  %853 = vmatpush3.bf16.msra.mxu1 %v850_v36  ;;  %v359_v28 = vpop.permute.xlu1 %358  ;;  %v722_v32 = vunpack.c.0.s8 %v721_v54 }
  0xce   :  { %762 = vmatmul.mubr.msk.f32.vlgmr.msra.gmra.mrb[0].mxu0 %vm361_vm0, %v1022_v24  ;;  %806 = vmatmul.mubr.msk.f32.vlgmr.msra.gmra.mrb[0].mxu1 %vm361_vm0, %v334_v39  ;;  %v912_v24 = vmov 0.0|0.0  }
  0xcf   :  { %444 = vmatprep.mubr.f32.mxu0 %v911_v25  ;;  %808 = vmatprep.mubr.msk.f32.mxu1 %vm361_vm0, %v335_v41 }
  0xd0   :  { %862 = vmatprep.subr.bf16.mxu0 %v912_v24 }
  0xd2   :  { %763 = vmatmul.mubr.msk.f32.gmra.mrb[2].mxu0 %vm361_vm0, %v334_v39  ;;  %809 = vmatmul.mubr.msk.f32.gmra.mrb[2].mxu1 %vm361_vm0, %v336_v42 }
  0xd3   :  { %450 = vmatprep.mubr.f32.mxu0 %v911_v25  ;;  %639 = vmatprep.mubr.f32.mxu1 %v911_v25 }
  0xd6   :  { %764 = vmatmul.mubr.msk.f32.gmra.mrb[4].mxu0 %vm361_vm0, %v335_v41  ;;  %v725_v41 = vsub.s32 %v722_v32, %v1030_v29 }
  0xd7   :  { %456 = vmatprep.mubr.f32.mxu0 %v911_v25 }
  0xda   :  { %765 = vmatmul.mubr.msk.f32.gmra.mrb[6].mxu0 %vm361_vm0, %v336_v42 }
  0xdb   :  { %819 = vmatprep.mubr.msk.f32.mxu0 %vm913_vm1, %v911_v25 }
 0x1a1   :  { %v440_v20 = vpop.f32.mrb[0].mxu0  ;;  %v807_v45 = vpop.f32.mrb[0].mxu1 }
 0x1a2   :  { %v535_v46 = vadd.f32 %v807_v45, %v349_v44  ;;  %v442_v31 = vpop.f32.mrb[1].mxu0  ;;  %v529_v47 = vpop.f32.mrb[1].mxu1  ;;  %v441_v57 = vadd.f32 %v440_v20, %v344_v43 }
 0x1a3   :  { %v530_v55 = vadd.f32 %v529_v47, %v344_v43  ;;  %v443_v9 = vadd.f32 %v442_v31, %v344_v43 }
 0x1a4   :  { %v553_v48 = vmax.f32 %v535_v46, 0.0  ;;  %v548_v3 = vmax.f32 %v441_v57, 0.0 }
 0x1a5   :  { %v550_v58 = vmax.f32 %v530_v55, 0.0  ;;  %v446_v59 = vpop.f32.mrb[2].mxu0  ;;  %v810_v60 = vpop.f32.mrb[2].mxu1  ;;  %v549_v6 = vmax.f32 %v443_v9, 0.0 }
 0x1a6   :  { %v447_v61 = vadd.f32 %v446_v59, %v349_v44  ;;  %v545_v62 = vadd.f32 %v810_v60, %v359_v28  ;;  %v448_v63 = vpop.f32.mrb[3].mxu0  ;;  %v539_v25 = vpop.f32.mrb[3].mxu1 }
 0x1a7   :  { %v863_v0 = vpack.c.bf16 %v553_v48, %v550_v58  ;;  %v449_v1 = vadd.f32 %v448_v63, %v349_v44  ;;  %v540_v2 = vadd.f32 %v539_v25, %v354_v56 }
 0x1a8   :  { %v551_v4 = vmax.f32 %v447_v61, 0.0  ;;  %v559_v5 = vmax.f32 %v545_v62, 0.0 }
 0x1a9   :  { %v552_v7 = vmax.f32 %v449_v1, 0.0  ;;  %v556_v8 = vmax.f32 %v540_v2, 0.0  ;;  %v452_v40 = vpop.f32.mrb[4].mxu0  ;;  %864 = vmatpush3.bf16.msra.mxu0 %v863_v0 }
 0x1aa   :  { %v856_v10 = vpack.c.bf16 %v551_v4, %v548_v3  ;;  %v454_v11 = vpop.f32.mrb[5].mxu0  ;;  %865 = vmatprep.subr.bf16.mxu0 %v912_v24  ;;  %v453_v13 = vadd.f32 %v452_v40, %v354_v56 }
 0x1ab   :  { %v854_v33 = vpack.c.bf16 %v552_v7, %v549_v6  ;;  %v866_v12 = vpack.c.bf16 %v559_v5, %v556_v8  ;;  %v455_v14 = vadd.f32 %v454_v11, %v354_v56 }
 0x1ac   :  { %v554_v17 = vmax.f32 %v453_v13, 0.0 }
 0x1ad   :  { %v458_v51 = vpop.f32.mrb[6].mxu0  ;;  %855 = vmatprep.subr.bf16.mxu1 %v854_v33  ;;  %867 = vmatpush3.bf16.msra.mxu0 %v866_v12  ;;  %v555_v21 = vmax.f32 %v455_v14, 0.0 }
 0x1ae   :  { %v459_v49 = vadd.f32 %v458_v51, %v359_v28  ;;  %v460_v16 = vpop.f32.mrb[7].mxu0  ;;  %857 = vmatpush1.bf16.msra.mxu1 %v856_v10 }
 0x1af   :  { %v461_v52 = vadd.f32 %v460_v16, %v359_v28 }
 0x1b0   :  { %v557_v18 = vmax.f32 %v459_v49, 0.0  ;;  %820 = vmatmul.mubr.msk.f32.vlgmr.msra.gmra.mrb[8].mxu0 %vm571_vm2, %v560_v15 }
 0x1b1   :  { %v558_v22 = vmax.f32 %v461_v52, 0.0 }
 0x1b2   :  { %v860_v23 = vpack.c.bf16 %v557_v18, %v554_v17 }
 0x1b3   :  { %v858_v27 = vpack.c.bf16 %v558_v22, %v555_v21 }
 0x1b5   :  { %859 = vmatprep.subr.bf16.mxu1 %v858_v27 }
 0x1b6   :  { %861 = vmatpush1.bf16.msra.mxu1 %v860_v23 }
 0x1b9   :  { %770 = vmatmul.mubr.msk.f32.vlgmr.msra.gmra.mrb[4].mxu1 %vm571_vm2, %v560_v15 }
 0x283   :  { %v712_v53 = vpop.f32.mrb[8].mxu0 }
 0x284   :  { %v821_v50 = vpop.f32.mrb[9].mxu0  ;;  %v713_v39 = vadd.f32 %v712_v53, %v570_v34 }
 0x286   :  { %v733_v43 = vrot.slane %v713_v39, %v725_v41 }
 0x28c   :  { %v641_v35 = vpop.f32.mrb[4].mxu1 }
 0x28d   :  { %v642_v36 = vadd.f32 %v641_v35, %v570_v34  ;;  %v643_v37 = vpop.f32.mrb[5].mxu1 }
 0x28e   :  { %v644_v42 = vadd.f32 %v643_v37, %v570_v34 }
 0x290   :  { %v719_v24 = vcombine.low %v642_v36, %v644_v42 }
 0x292   :  { %v726_v44 = vrot.slane %v719_v24, %v725_v41 }
 0x294   :  { %v734_v20 = vcombine.low %v726_v44, %v733_v43 }
 0x296   :  { %v741_v45 = vrot.slane %v734_v20, %v725_v41 }
 0x298   :  { %747 = vst.msk [vmem:[#allocation3] sm:$0x7] %vm745_vm3, %v741_v45 }
 0x299   :  { %896 = shalt.err (!%p893_p4)
}
 0x29a   :  { %s897_s30 = scalar_lea.hbm %s1182_s7, 48 }
 0x29b   :  { %p898_p5 = scmp.ne.s32.totalorder %s1182_s7, %s897_s30  ;;  %p901_p6 = scmp.lt.u32.totalorder %s897_s30, %s1182_s7 }
 0x29d   :  { %p903_p7 = pnand %p901_p6, %p898_p5 }
 0x29f   :  { %906 = shalt.err (!%p903_p7)
}
 0x2a0   :  { %757 = dma.vmem_to_hbm [thread:$0]  %s755_s25, 48, %s1182_s7, [#allocation4]  }
 0x2a1   :  { %907 = dma.done.wait [#allocation4], 48  }
 0x2a2   :  { %908 = vsyncadd [#allocation4], 4294967248 }
 0x2a3   :  { %761 = vsyncpa [#allocation4], 1 }

</bundles_post_ra>
